<compile_context>
chip_gen: v7x
topology: tpu7x:2x2x1
jax: 0.10.0
libtpu: 0.0.40
codegen_flags: <defaults>
</compile_context>

<pallas_src>
import numpy as np
from functools import lru_cache, partial

import jax
import jax.numpy as jnp
from jax import lax
from jax.experimental import pallas as pl
from jax.experimental.pallas import tpu as pltpu

DT = jnp.float32
LSA_TILE = 128      # query-row / contraction-row tile of the attention aggregation kernel
ROW_TILE = 128      # output-row tile of the gather / max-pool kernels
POOL_SLOTS = 8      # max children per parent for 2x2x2 stride-2 pooling


def _round_up(n, m):
    return ((int(n) + m - 1) // m) * m


# ----------------------------------------------------------------------------------
# Pallas kernels
# ----------------------------------------------------------------------------------
def _matmul_kernel(a_ref, b_ref, o_ref):
    o_ref[...] = jnp.dot(a_ref[...], b_ref[...], preferred_element_type=jnp.float32)


def _bn_train(y, g, b, eps=1e-5):
    # TODO(synk): training-mode BatchNorm (batch statistics over all rows of this call),
    #             matching the reference module's default behaviour; no running stats.
    mu = jnp.mean(y, axis=0, keepdims=True)
    var = jnp.mean((y - mu) ** 2, axis=0, keepdims=True)
    return (y - mu) * lax.rsqrt(var + jnp.float32(eps)) * g + b


def _linear_bn_act_kernel(x_ref, w_ref, b_ref, g_ref, bt_ref, o_ref, *, use_bias, use_bn, act):
    y = jnp.dot(x_ref[...], w_ref[...], preferred_element_type=jnp.float32)
    if use_bias:
        y = y + b_ref[...]
    if use_bn:
        y = _bn_train(y, g_ref[...], bt_ref[...])
    if act == "relu":
        y = jnp.maximum(y, 0.0)
    elif act == "tanh":
        y = jnp.tanh(y)
    o_ref[...] = y


def _bn_add_act_kernel(x_ref, res_ref, g_ref, b_ref, o_ref, *, add_res, relu):
    y = _bn_train(x_ref[...], g_ref[...], b_ref[...])
    if add_res:
        y = y + res_ref[...]
    if relu:
        y = jnp.maximum(y, 0.0)
    o_ref[...] = y


def _lsa_pre_kernel(x_ref, npts_ref,
                    w1_ref, g1_ref, be1_ref, w2_ref, g2_ref, be2_ref, w3_ref, b3_ref,
                    wq_ref, bq_ref, wv_ref, bv_ref, et_ref, e_ref, qmat_ref,
                    attn_ref, v_ref):
    """Whole-M part of LightweightSelfAttentionLayer.

    intra_pos_mlp (needs full-M BN stats) -> x + intra -> q/v projections ->
    per-head L2 normalisation of q -> cosine attention against the (pre-normalised)
    inter positional encoding, folded into qmat so attn = qn @ qmat, shape (M, K*H).
    """
    f32 = jnp.float32
    t = jnp.dot(npts_ref[...], w1_ref[...], preferred_element_type=f32)
    t = jnp.maximum(_bn_train(t, g1_ref[...], be1_ref[...]), 0.0)
    t = jnp.dot(t, w2_ref[...], preferred_element_type=f32)
    t = jnp.maximum(_bn_train(t, g2_ref[...], be2_ref[...]), 0.0)
    intra = jnp.dot(t, w3_ref[...], preferred_element_type=f32) + b3_ref[...]

    x = x_ref[...] + intra
    q = jnp.dot(x, wq_ref[...], preferred_element_type=f32) + bq_ref[...]
    v = jnp.dot(x, wv_ref[...], preferred_element_type=f32) + bv_ref[...]

    # per-head L2 norm via 0/1 head-sum / head-expand matrices (no reshapes in-kernel)
    ss = jnp.dot(q * q, et_ref[...], preferred_element_type=f32)          # (M, H)
    nrm = jnp.sqrt(jnp.dot(ss, e_ref[...], preferred_element_type=f32))   # (M, Cout)
    qn = q / jnp.maximum(nrm, f32(1e-12))                                 # F.normalize(p=2)

    attn_ref[...] = jnp.dot(qn, qmat_ref[...], preferred_element_type=f32)  # (M, K*H)
    v_ref[...] = v


def _lsa_agg_kernel(a_ref, v_ref, attn_ref, e_ref, wo_ref, bo_ref, o_ref, acc_ref):
    """Tiled neighbourhood aggregation.

    grid = (query tiles i, contraction tiles j, kernel offsets k).
    acc[m, c] += attn[m, k, head(c)] * sum_i A[k, m, i] * v[i, c]
    Final step applies the to_out linear (+bias).
    """
    j = pl.program_id(1)
    k = pl.program_id(2)

    @pl.when(jnp.logical_and(j == 0, k == 0))
    def _():
        acc_ref[...] = jnp.zeros_like(acc_ref)

    a_k = a_ref[0]                                                       # (TM, TMI) bf16
    g_k = jnp.dot(a_k, v_ref[...], preferred_element_type=jnp.float32)   # (TM, Cout)
    w_k = jnp.dot(attn_ref[0], e_ref[...],                               # (TM, H)@(H, Cout)
                  preferred_element_type=jnp.float32)
    acc_ref[...] += w_k * g_k

    @pl.when(jnp.logical_and(j == pl.num_programs(1) - 1, k == pl.num_programs(2) - 1))
    def _():
        o_ref[...] = (jnp.dot(acc_ref[...], wo_ref[...],
                              preferred_element_type=jnp.float32) + bo_ref[...])


def _maxpool_kernel(idx_ref, x_ref, o_ref, *, rows, slots):
    """Running max over per-parent child index lists (scalar-prefetched into SMEM)."""
    i = pl.program_id(0)

    def body(r, carry):
        base = (i * rows + r) * slots
        m = x_ref[pl.ds(idx_ref[base], 1), :]
        for s in range(1, slots):
            m = jnp.maximum(m, x_ref[pl.ds(idx_ref[base + s], 1), :])
        o_ref[pl.ds(r, 1), :] = m
        return carry

    lax.fori_loop(0, rows, body, 0)


def _gather_rows_kernel(idx_ref, x_ref, o_ref, *, rows):
    """out[r] = src[idx[r]]  (pooling-transpose "copy parent to children", slice)."""
    i = pl.program_id(0)

    def body(r, carry):
        g = i * rows + r
        o_ref[pl.ds(r, 1), :] = x_ref[pl.ds(idx_ref[g], 1), :]
        return carry

    lax.fori_loop(0, rows, body, 0)


# ----------------------------------------------------------------------------------
# cached pallas_call builders (one compile per distinct shape/flag combo)
# ----------------------------------------------------------------------------------
@lru_cache(maxsize=None)
def _matmul_call(m, k, n):
    return jax.jit(pl.pallas_call(_matmul_kernel, out_shape=jax.ShapeDtypeStruct((m, n), DT)))


def pallas_matmul(a, b):
    return _matmul_call(int(a.shape[0]), int(a.shape[1]), int(b.shape[1]))(a, b)


@lru_cache(maxsize=None)
def _linear_call(m, cin, cout, use_bias, use_bn, act):
    kern = partial(_linear_bn_act_kernel, use_bias=use_bias, use_bn=use_bn, act=act)
    return jax.jit(pl.pallas_call(kern, out_shape=jax.ShapeDtypeStruct((m, cout), DT)))


def linear_bn_act(x, w, b=None, gamma=None, beta=None, use_bn=False, act="none"):
    m, cout = int(x.shape[0]), int(w.shape[1])
    b_ = b if b is not None else jnp.zeros((1, cout), DT)
    g_ = gamma if gamma is not None else jnp.ones((1, cout), DT)
    bt_ = beta if beta is not None else jnp.zeros((1, cout), DT)
    return _linear_call(m, int(w.shape[0]), cout, b is not None, use_bn, act)(x, w, b_, g_, bt_)


@lru_cache(maxsize=None)
def _bn_call(m, c, add_res, relu):
    kern = partial(_bn_add_act_kernel, add_res=add_res, relu=relu)
    return jax.jit(pl.pallas_call(kern, out_shape=jax.ShapeDtypeStruct((m, c), DT)))


def bn_add_act(x, gamma, beta, res=None, relu=True):
    m, c = int(x.shape[0]), int(x.shape[1])
    r = res if res is not None else x
    return _bn_call(m, c, res is not None, relu)(x, r, gamma, beta)


@lru_cache(maxsize=None)
def _lsa_pre_call(m, cin, cout, kvol, heads):
    return pl.pallas_call(
        _lsa_pre_kernel,
        out_shape=(jax.ShapeDtypeStruct((m, kvol * heads), DT),
                   jax.ShapeDtypeStruct((m, cout), DT)))


@lru_cache(maxsize=None)
def _lsa_agg_call(m_pad, cout, kvol, heads):
    tm = tmi = LSA_TILE
    nq, ni = m_pad // tm, m_pad // tmi
    grid_spec = pltpu.PrefetchScalarGridSpec(
        num_scalar_prefetch=0,
        grid=(nq, ni, kvol),
        in_specs=[
            pl.BlockSpec((1, tm, tmi), lambda i, j, k: (k, i, j)),     # A  (bf16)
            pl.BlockSpec((tmi, cout), lambda i, j, k: (j, 0)),         # v  (bf16)
            pl.BlockSpec((1, tm, heads), lambda i, j, k: (k, i, 0)),   # attn (f32)
            pl.BlockSpec((heads, cout), lambda i, j, k: (0, 0)),       # head-expand E
            pl.BlockSpec((cout, cout), lambda i, j, k: (0, 0)),        # to_out weight
            pl.BlockSpec((1, cout), lambda i, j, k: (0, 0)),           # to_out bias
        ],
        out_specs=pl.BlockSpec((tm, cout), lambda i, j, k: (i, 0)),
        scratch_shapes=[pltpu.VMEM((tm, cout), jnp.float32)],
    )
    return pl.pallas_call(
        _lsa_agg_kernel,
        out_shape=jax.ShapeDtypeStruct((m_pad, cout), DT),
        grid_spec=grid_spec,
        compiler_params=pltpu.CompilerParams(
            dimension_semantics=("parallel", "arbitrary", "arbitrary")))


@lru_cache(maxsize=None)
def _lsa_layer_fn(m, m_pad, cin, cout, kvol, heads):
    pre = _lsa_pre_call(m, cin, cout, kvol, heads)
    agg = _lsa_agg_call(m_pad, cout, kvol, heads)

    def fwd(x, npts, a_kmm, w1, g1, be1, w2, g2, be2, w3, b3,
            wq, bq, wv, bv, emat, etmat, qmat, wo, bo):
        attn_flat, v = pre(x, npts, w1, g1, be1, w2, g2, be2, w3, b3,
                           wq, bq, wv, bv, etmat, emat, qmat)
        attn = attn_flat.reshape(m, kvol, heads).transpose(1, 0, 2)      # (K, M, H)
        attn = jnp.pad(attn, ((0, 0), (0, m_pad - m), (0, 0)))
        v_pad = jnp.pad(v, ((0, m_pad - m), (0, 0))).astype(jnp.bfloat16)
        out_pad = agg(a_kmm, v_pad, attn, emat, wo, bo)
        return out_pad[:m]

    return jax.jit(fwd)


@lru_cache(maxsize=None)
def _maxpool_call(mop, msrc, c):
    kern = partial(_maxpool_kernel, rows=ROW_TILE, slots=POOL_SLOTS)
    grid_spec = pltpu.PrefetchScalarGridSpec(
        num_scalar_prefetch=1,
        grid=(mop // ROW_TILE,),
        in_specs=[pl.BlockSpec((msrc, c), lambda i, idx: (0, 0))],
        out_specs=pl.BlockSpec((ROW_TILE, c), lambda i, idx: (i, 0)),
    )
    return jax.jit(pl.pallas_call(
        kern, out_shape=jax.ShapeDtypeStruct((mop, c), DT), grid_spec=grid_spec,
        compiler_params=pltpu.CompilerParams(dimension_semantics=("arbitrary",))))


def maxpool(x, idx8, m_out):
    mop = int(idx8.shape[0]) // POOL_SLOTS
    out = _maxpool_call(mop, int(x.shape[0]), int(x.shape[1]))(idx8, x)
    return out[:m_out]


@lru_cache(maxsize=None)
def _gather_call(mop, msrc, c):
    kern = partial(_gather_rows_kernel, rows=ROW_TILE)
    grid_spec = pltpu.PrefetchScalarGridSpec(
        num_scalar_prefetch=1,
        grid=(mop // ROW_TILE,),
        in_specs=[pl.BlockSpec((msrc, c), lambda i, idx: (0, 0))],
        out_specs=pl.BlockSpec((ROW_TILE, c), lambda i, idx: (i, 0)),
    )
    return jax.jit(pl.pallas_call(
        kern, out_shape=jax.ShapeDtypeStruct((mop, c), DT), grid_spec=grid_spec,
        compiler_params=pltpu.CompilerParams(dimension_semantics=("arbitrary",))))


def gather_rows(x, idx, m_out):
    out = _gather_call(int(idx.shape[0]), int(x.shape[0]), int(x.shape[1]))(idx, x)
    return out[:m_out]


# ----------------------------------------------------------------------------------
# parameters (deterministic synthetic init)
# ----------------------------------------------------------------------------------
class ParamFactory:
    def __init__(self, seed):
        self._key = jax.random.PRNGKey(seed)

    def _take(self):
        self._key, k = jax.random.split(self._key)
        return k

    def normal(self, shape, std=0.05):
        return std * jax.random.normal(self._take(), shape, dtype=DT)

    def ones(self, shape):
        return jnp.ones(shape, DT)

    def zeros(self, shape):
        return jnp.zeros(shape, DT)


class LSALayerP:
    """LightweightSelfAttentionLayer parameters + Pallas forward (pre kernel + tiled agg)."""

    def __init__(self, pf, in_channels, out_channels=None, kernel_size=3, num_heads=8):
        out_channels = in_channels if out_channels is None else out_channels
        assert out_channels % num_heads == 0 and kernel_size % 2 == 1
        self.in_ch, self.out_ch, self.H = in_channels, out_channels, num_heads
        self.Ca = out_channels // num_heads
        self.K = kernel_size ** 3                      # kernel_volume (dimension=3)
        self.w1 = pf.normal((3, 3));  self.g1 = pf.ones((1, 3));  self.be1 = pf.zeros((1, 3))
        self.w2 = pf.normal((3, in_channels)); self.g2 = pf.ones((1, in_channels)); self.be2 = pf.zeros((1, in_channels))
        self.w3 = pf.normal((in_channels, in_channels)); self.b3 = pf.zeros((1, in_channels))
        self.wq = pf.normal((in_channels, out_channels)); self.bq = pf.zeros((1, out_channels))
        self.wv = pf.normal((in_channels, out_channels)); self.bv = pf.zeros((1, out_channels))
        self.wo = pf.normal((out_channels, out_channels)); self.bo = pf.zeros((1, out_channels))
        self.pe = pf.normal((self.K, out_channels), std=1.0)   # inter_pos_enc ~ N(0, 1)

        # constant 0/1 head-expansion matrices + per-head normalised pos-enc folded into
        # a single (Cout, K*H) matrix so attn = qn @ Qmat inside the pre kernel.
        H, Ca, K, Cout = self.H, self.Ca, self.K, self.out_ch
        E = np.zeros((H, Cout), np.float32)
        for h in range(H):
            E[h, h * Ca:(h + 1) * Ca] = 1.0
        pe_np = np.asarray(self.pe, np.float32)
        pn = np.zeros_like(pe_np)
        for h in range(H):
            blk = pe_np[:, h * Ca:(h + 1) * Ca]
            nrm = np.maximum(np.linalg.norm(blk, axis=1, keepdims=True), 1e-12)
            pn[:, h * Ca:(h + 1) * Ca] = blk / nrm
        Q = np.zeros((Cout, K * H), np.float32)
        cols = np.arange(K) * H
        for h in range(H):
            Q[h * Ca:(h + 1) * Ca, cols + h] = pn[:, h * Ca:(h + 1) * Ca].T
        self.E = jnp.asarray(E, DT)
        self.Et = jnp.asarray(np.ascontiguousarray(E.T), DT)
        self.Q = jnp.asarray(Q, DT)

    def __call__(self, x, norm_points, a_kmm):
        m = int(x.shape[0])
        m_pad = int(a_kmm.shape[1])
        fn = _lsa_layer_fn(m, m_pad, self.in_ch, self.out_ch, self.K, self.H)
        return fn(x, norm_points, a_kmm,
                  self.w1, self.g1, self.be1, self.w2, self.g2, self.be2, self.w3, self.b3,
                  self.wq, self.bq, self.wv, self.bv, self.E, self.Et, self.Q,
                  self.wo, self.bo)


class LSABlockP:
    # TODO(synk): ResidualBlockWithPointsBase source not provided; assumed standard
    #             2-layer residual block (layer->BN->ReLU->layer->BN->(+skip)->ReLU).
    def __init__(self, pf, channels):
        self.l1 = LSALayerP(pf, channels)
        self.g1, self.b1 = pf.ones((1, channels)), pf.zeros((1, channels))
        self.l2 = LSALayerP(pf, channels)
        self.g2, self.b2 = pf.ones((1, channels)), pf.zeros((1, channels))

    def __call__(self, x, norm_points, a_kmm):
        res = x
        out = bn_add_act(self.l1(x, norm_points, a_kmm), self.g1, self.b1, relu=True)
        out = bn_add_act(self.l2(out, norm_points, a_kmm), self.g2, self.b2, res=res, relu=True)
        return out


class FastPointTransformerPallas:
    INIT_DIM = 32
    ENC_DIM = 32
    LAYERS = (2, 3, 4, 6, 2, 2, 2, 2)
    PLANES = (64, 128, 384, 640, 384, 384, 256, 128)

    def __init__(self, in_channels, out_channels, activation_checkpointing=False, seed=1234):
        del activation_checkpointing  # forward semantics identical
        pf = ParamFactory(seed)
        P, L, E = self.PLANES, self.LAYERS, self.ENC_DIM
        # enc_mlp: Linear(3,E,nobias)->BN->Tanh->Linear(E,E,nobias)->BN->Tanh
        self.enc_w1 = pf.normal((3, E)); self.enc_g1 = pf.ones((1, E)); self.enc_b1 = pf.zeros((1, E))
        self.enc_w2 = pf.normal((E, E)); self.enc_g2 = pf.ones((1, E)); self.enc_b2 = pf.zeros((1, E))

        def bn(c):
            return (pf.ones((1, c)), pf.zeros((1, c)))

        self.attn0 = LSALayerP(pf, in_channels + E, self.INIT_DIM, kernel_size=5); self.bn0 = bn(self.INIT_DIM)
        self.attn1 = LSALayerP(pf, self.INIT_DIM, P[0]); self.bn1 = bn(P[0])
        self.block1 = [LSABlockP(pf, P[0]) for _ in range(L[0])]
        self.attn2 = LSALayerP(pf, P[0], P[1]); self.bn2 = bn(P[1])
        self.block2 = [LSABlockP(pf, P[1]) for _ in range(L[1])]
        self.attn3 = LSALayerP(pf, P[1], P[2]); self.bn3 = bn(P[2])
        self.block3 = [LSABlockP(pf, P[2]) for _ in range(L[2])]
        self.attn4 = LSALayerP(pf, P[2], P[3]); self.bn4 = bn(P[3])
        self.block4 = [LSABlockP(pf, P[3]) for _ in range(L[3])]
        self.attn5 = LSALayerP(pf, P[3] + P[3], P[4]); self.bn5 = bn(P[4])
        self.block5 = [LSABlockP(pf, P[4]) for _ in range(L[4])]
        self.attn6 = LSALayerP(pf, P[4] + P[2], P[5]); self.bn6 = bn(P[5])
        self.block6 = [LSABlockP(pf, P[5]) for _ in range(L[5])]
        self.attn7 = LSALayerP(pf, P[5] + P[1], P[6]); self.bn7 = bn(P[6])
        self.block7 = [LSABlockP(pf, P[6]) for _ in range(L[6])]
        self.attn8 = LSALayerP(pf, P[6] + P[0], P[7]); self.bn8 = bn(P[7])
        self.block8 = [LSABlockP(pf, P[7]) for _ in range(L[7])]
        # final: Linear(P7+E, P7, nobias)->BN->ReLU->Linear(P7, out)
        self.fin_w1 = pf.normal((P[7] + E, P[7])); self.fin_g1 = pf.ones((1, P[7])); self.fin_b1 = pf.zeros((1, P[7]))
        self.fin_w2 = pf.normal((P[7], out_channels)); self.fin_b2 = pf.zeros((1, out_channels))

    def forward(self, feats, geo):
        # --- voxelize_with_centroids ---
        pos = linear_bn_act(geo["norm_points"], self.enc_w1, gamma=self.enc_g1, beta=self.enc_b1,
                            use_bn=True, act="tanh")
        pos = linear_bn_act(pos, self.enc_w2, gamma=self.enc_g2, beta=self.enc_b2,
                            use_bn=True, act="tanh")
        # TODO(synk): UNWEIGHTED_AVERAGE voxelisation kept as a dense averaging matmul
        #             (input stage only); a segment-mean scatter kernel would avoid it.
        vox_f = pallas_matmul(geo["avg1"], feats)
        down_pos = pallas_matmul(geo["avg1"], pos)
        out = jnp.concatenate([vox_f, down_pos], axis=1)

        np1, np2, np4, np8, np16 = geo["np1"], geo["np2"], geo["np4"], geo["np8"], geo["np16"]
        A1k5, A1, A2, A4, A8, A16 = geo["A1k5"], geo["A1"], geo["A2"], geo["A4"], geo["A8"], geo["A16"]
        M1, M2, M4, M8, M16 = (np1.shape[0], np2.shape[0], np4.shape[0],
                               np8.shape[0], np16.shape[0])
        N = geo["norm_points"].shape[0]

        out = bn_add_act(self.attn0(out, np1, A1k5), *self.bn0, relu=True)
        out_p1 = bn_add_act(self.attn1(out, np1, A1), *self.bn1, relu=True)

        out = maxpool(out_p1, geo["P12_idx"], M2)
        for blk in self.block1:
            out = blk(out, np2, A2)
        out_p2 = bn_add_act(self.attn2(out, np2, A2), *self.bn2, relu=True)

        out = maxpool(out_p2, geo["P24_idx"], M4)
        for blk in self.block2:
            out = blk(out, np4, A4)
        out_p4 = bn_add_act(self.attn3(out, np4, A4), *self.bn3, relu=True)

        out = maxpool(out_p4, geo["P48_idx"], M8)
        for blk in self.block3:
            out = blk(out, np8, A8)
        out_p8 = bn_add_act(self.attn4(out, np8, A8), *self.bn4, relu=True)

        out = maxpool(out_p8, geo["P816_idx"], M16)
        for blk in self.block4:
            out = blk(out, np16, A16)

        # TODO(synk): exact ME.MinkowskiPoolingTranspose normalization not replicated;
        #             plain copy-to-children (row gather) used.
        out = gather_rows(out, geo["U168_idx"], M8)
        out = jnp.concatenate([out, out_p8], axis=1)
        out = bn_add_act(self.attn5(out, np8, A8), *self.bn5, relu=True)
        for blk in self.block5:
            out = blk(out, np8, A8)

        out = gather_rows(out, geo["U84_idx"], M4)
        out = jnp.concatenate([out, out_p4], axis=1)
        out = bn_add_act(self.attn6(out, np4, A4), *self.bn6, relu=True)
        for blk in self.block6:
            out = blk(out, np4, A4)

        out = gather_rows(out, geo["U42_idx"], M2)
        out = jnp.concatenate([out, out_p2], axis=1)
        out = bn_add_act(self.attn7(out, np2, A2), *self.bn7, relu=True)
        for blk in self.block7:
            out = blk(out, np2, A2)

        out = gather_rows(out, geo["U21_idx"], M1)
        out = jnp.concatenate([out, out_p1], axis=1)
        out = bn_add_act(self.attn8(out, np1, A1), *self.bn8, relu=True)
        for blk in self.block8:
            out = blk(out, np1, A1)

        # --- devoxelize_with_centroids ---
        sliced = gather_rows(out, geo["slice_idx"], N)       # out.slice(x)
        h = jnp.concatenate([sliced, pos], axis=1)
        h = linear_bn_act(h, self.fin_w1, gamma=self.fin_g1, beta=self.fin_b1, use_bn=True, act="relu")
        h = linear_bn_act(h, self.fin_w2, b=self.fin_b2, use_bn=False, act="none")
        return h


# ----------------------------------------------------------------------------------
# host-side geometry (ME coordinate manager equivalent; pure index bookkeeping)
# ----------------------------------------------------------------------------------
def _unique_rows(arr):
    lut, coords, inv = {}, [], np.zeros(len(arr), np.int64)
    for i, row in enumerate(arr):
        t = tuple(int(v) for v in row)
        if t not in lut:
            lut[t] = len(coords)
            coords.append(t)
        inv[i] = lut[t]
    return np.asarray(coords, np.int64), inv


def _kernel_adjacency(coords, stride, ksize, m_pad):
    """Dense kernel-map adjacency A[k, query, key], zero-padded to (K, m_pad, m_pad)."""
    K, M = ksize ** 3, coords.shape[0]
    lut = {tuple(int(v) for v in c): i for i, c in enumerate(coords)}
    A = np.zeros((K, m_pad, m_pad), np.float32)
    r, k = ksize // 2, 0
    for dx in range(-r, r + 1):
        for dy in range(-r, r + 1):
            for dz in range(-r, r + 1):
                for qi in range(M):
                    nb = (int(coords[qi, 0]) + dx * stride,
                          int(coords[qi, 1]) + dy * stride,
                          int(coords[qi, 2]) + dz * stride)
                    j = lut.get(nb)
                    if j is not None:
                        A[k, qi, j] = 1.0
                k += 1
    return A


def _pad_idx(idx, tile=ROW_TILE):
    n = len(idx)
    out = np.zeros(_round_up(max(n, 1), tile), np.int64)
    out[:n] = idx
    return out.astype(np.int32)


def _pool_child_idx(inv, m_out, tile=ROW_TILE, slots=POOL_SLOTS):
    children = [[] for _ in range(m_out)]
    for fine_i, parent in enumerate(inv):
        children[int(parent)].append(fine_i)
    mop = _round_up(max(m_out, 1), tile)
    idx = np.zeros((mop, slots), np.int64)
    for p in range(m_out):
        ch = children[p]
        assert 1 <= len(ch) <= slots
        for s in range(slots):
            idx[p, s] = ch[s] if s < len(ch) else ch[0]   # repeat first child -> max unchanged
    return idx.reshape(-1).astype(np.int32)


def build_geometry(points):
    N = points.shape[0]
    geo = {}
    vox = np.floor(points).astype(np.int64)
    coords1, tmap = _unique_rows(vox)
    M1 = coords1.shape[0]
    counts1 = np.bincount(tmap, minlength=M1).astype(np.float32)
    cent1 = np.zeros((M1, 3), np.float32)
    np.add.at(cent1, tmap, points.astype(np.float32))
    cent1 /= counts1[:, None]
    avg1 = np.zeros((M1, N), np.float32)
    avg1[tmap, np.arange(N)] = 1.0
    avg1 /= counts1[:, None]
    geo["avg1"] = avg1
    geo["slice_idx"] = _pad_idx(tmap)
    geo["norm_points"] = points.astype(np.float32) - cent1[tmap]
    geo["np1"] = (cent1 - coords1.astype(np.float32)) / 1.0 - 0.5
    m1_pad = _round_up(M1, LSA_TILE)
    geo["A1k5"] = _kernel_adjacency(coords1, 1, 5, m1_pad)
    geo["A1"] = _kernel_adjacency(coords1, 1, 3, m1_pad)

    coords, cent, counts = coords1, cent1, counts1
    for pname, uname, aname, nname, new_stride in (
            ("P12", "U21", "A2", "np2", 2), ("P24", "U42", "A4", "np4", 4),
            ("P48", "U84", "A8", "np8", 8), ("P816", "U168", "A16", "np16", 16)):
        parent = (coords // new_stride) * new_stride
        coords_c, inv = _unique_rows(parent)
        Mc = coords_c.shape[0]
        counts_c = np.zeros(Mc, np.float32)
        np.add.at(counts_c, inv, counts)
        cent_c = np.zeros((Mc, 3), np.float32)
        np.add.at(cent_c, inv, cent * counts[:, None])
        cent_c /= counts_c[:, None]                                   # stride_centroids
        geo[pname + "_idx"] = _pool_child_idx(inv, Mc)                # max-pool children
        geo[uname + "_idx"] = _pad_idx(inv)                           # pooling-transpose parent
        geo[aname] = _kernel_adjacency(coords_c, new_stride, 3, _round_up(Mc, LSA_TILE))
        geo[nname] = (cent_c - coords_c.astype(np.float32)) / float(new_stride) - 0.5
        coords, cent, counts = coords_c, cent_c, counts_c

    out = {}
    for k, v in geo.items():
        if k.endswith("_idx"):
            out[k] = jnp.asarray(v, jnp.int32)
        elif k.startswith("A"):
            out[k] = jnp.asarray(v, jnp.bfloat16)     # 0/1 adjacency, exact in bf16
        else:
            out[k] = jnp.asarray(v, DT)
    return out


# ----------------------------------------------------------------------------------
if __name__ == "__main__":
    key = jax.random.PRNGKey(0)
    kf, kc = jax.random.split(key)
    N, in_channels, out_channels = 64, 3, 4
    feats = jax.random.normal(kf, (N, in_channels), dtype=DT)
    pts = jax.random.uniform(kc, (N, 3), dtype=DT, minval=0.0, maxval=16.0)

    geo = build_geometry(np.asarray(pts))
    model = FastPointTransformerPallas(in_channels, out_channels, activation_checkpointing=False)

    out = model.forward(feats, geo)
    out = jax.block_until_ready(out)
    assert out.shape == (N, out_channels)
    assert bool(jnp.all(jnp.isfinite(out)))
    print("KERNEL_OK")
</pallas_src>

<mosaic_0001>
module attributes {stable_mosaic.version = 11 : i64} {
  func.func @_linear_bn_act_kernel(%arg0: memref<64x3xf32, #tpu.memory_space<vmem>>, %arg1: memref<3x32xf32, #tpu.memory_space<vmem>>, %arg2: memref<1x32xf32, #tpu.memory_space<vmem>>, %arg3: memref<1x32xf32, #tpu.memory_space<vmem>>, %arg4: memref<1x32xf32, #tpu.memory_space<vmem>>, %arg5: memref<64x32xf32, #tpu.memory_space<vmem>>) attributes {dimension_semantics = [], scalar_prefetch = 0 : i64, scratch_operands = 0 : i64, tpu.core_type = #tpu.core_type<tc>} {
    %c0 = arith.constant 0 : index
    %c0_0 = arith.constant 0 : index
    %0 = vector.load %arg0[%c0, %c0_0] : memref<64x3xf32, #tpu.memory_space<vmem>>, vector<64x3xf32>
    %c0_1 = arith.constant 0 : index
    %c0_2 = arith.constant 0 : index
    %1 = vector.load %arg1[%c0_1, %c0_2] : memref<3x32xf32, #tpu.memory_space<vmem>>, vector<3x32xf32>
    %cst = arith.constant dense<0.000000e+00> : vector<64x32xf32>
    %2 = tpu.matmul %0, %1, %cst {dimension_numbers = #tpu.dot_dimension_numbers<[1], [0], [0], [1], [0, 0, 1, 1], [], []>} : vector<64x3xf32>, vector<3x32xf32>, vector<64x32xf32> -> vector<64x32xf32>
    %c0_3 = arith.constant 0 : index
    %c0_4 = arith.constant 0 : index
    %3 = vector.load %arg3[%c0_3, %c0_4] : memref<1x32xf32, #tpu.memory_space<vmem>>, vector<1x32xf32>
    %c0_5 = arith.constant 0 : index
    %c0_6 = arith.constant 0 : index
    %4 = vector.load %arg4[%c0_5, %c0_6] : memref<1x32xf32, #tpu.memory_space<vmem>>, vector<1x32xf32>
    %cst_7 = arith.constant dense<0.000000e+00> : vector<32xf32>
    %5 = vector.multi_reduction <add>, %2, %cst_7 [0] : vector<64x32xf32> to vector<32xf32>
    %6 = vector.shape_cast %5 : vector<32xf32> to vector<1x32xf32>
    %cst_8 = arith.constant 6.400000e+01 : f32
    %7 = vector.broadcast %cst_8 : f32 to vector<1x32xf32>
    %8 = arith.divf %6, %7 : vector<1x32xf32>
    %9 = vector.broadcast %8 : vector<1x32xf32> to vector<64x32xf32>
    %10 = arith.subf %2, %9 : vector<64x32xf32>
    %11 = arith.mulf %10, %10 : vector<64x32xf32>
    %cst_9 = arith.constant dense<0.000000e+00> : vector<32xf32>
    %12 = vector.multi_reduction <add>, %11, %cst_9 [0] : vector<64x32xf32> to vector<32xf32>
    %13 = vector.shape_cast %12 : vector<32xf32> to vector<1x32xf32>
    %cst_10 = arith.constant 6.400000e+01 : f32
    %14 = vector.broadcast %cst_10 : f32 to vector<1x32xf32>
    %15 = arith.divf %13, %14 : vector<1x32xf32>
    %16 = vector.broadcast %8 : vector<1x32xf32> to vector<64x32xf32>
    %17 = arith.subf %2, %16 : vector<64x32xf32>
    %cst_11 = arith.constant 9.99999974E-6 : f32
    %18 = vector.broadcast %cst_11 : f32 to vector<1x32xf32>
    %19 = arith.addf %15, %18 : vector<1x32xf32>
    %20 = math.rsqrt %19 : vector<1x32xf32>
    %21 = vector.broadcast %20 : vector<1x32xf32> to vector<64x32xf32>
    %22 = arith.mulf %17, %21 : vector<64x32xf32>
    %23 = vector.broadcast %3 : vector<1x32xf32> to vector<64x32xf32>
    %24 = arith.mulf %22, %23 : vector<64x32xf32>
    %25 = vector.broadcast %4 : vector<1x32xf32> to vector<64x32xf32>
    %26 = arith.addf %24, %25 : vector<64x32xf32>
    %27 = math.tanh %26 : vector<64x32xf32>
    %c0_12 = arith.constant 0 : index
    %c0_13 = arith.constant 0 : index
    %28 = vector.load %arg5[%c0_12, %c0_13] : memref<64x32xf32, #tpu.memory_space<vmem>>, vector<64x32xf32>
    tpu.vector_store %arg5[%c0_12, %c0_13], %27 {strides = array<i32>} : memref<64x32xf32, #tpu.memory_space<vmem>>, vector<64x32xf32>,
    return
  }
}

</mosaic_0001>

<bundles_post_ra>
// kernel: tpu_custom_call.1
= control target key start
LH: loop header
LB: loop body
LE: loop exit
PB: predicated region body
PF: predicated region fallthrough
CT: control target
= control target key end

     0   :  { %vm54_vm0 = vcmask 1042432   ;;  %vm29_vm1 = vcmask 23552   ;;  %vm165_vm2 = vcmask 261120   ;;  %s458_s1 = inlined_call_operand.vmem [shape: f32[3,32], index: 1, kind: input, shape index: {}]   ;;  %s459_s2 = inlined_call_operand.vmem [shape: f32[1,32], index: 2, kind: input, shape index: {}]   ;;  %s460_s0 = inlined_call_operand.vmem [shape: f32[64,3], index: 0, kind: input, shape index: {}]   ;;  %s461_s3 = inlined_call_operand.vmem [shape: f32[1,32], index: 3, kind: input, shape index: {}]   ;;  %s462_s4 = inlined_call_operand.vmem [shape: f32[1,32], index: 4, kind: input, shape index: {}]   ;;  %s463_s5 = inlined_call_operand.vmem [shape: f32[64,32], index: 5, kind: output, shape index: {}]  }
   0x1   :  { %v28_v0 = vld [vmem:[%s458_s1] sm:$0x7]  ;;  %v21_v2 = vld [vmem:[%s460_s0 + $0x8] sm:$0xff]  ;;  %v22_v3 = vld [vmem:[%s460_s0 + $0x10] sm:$0xff] }
   0x2   :  { %v20_v1 = vld [vmem:[%s460_s0] sm:$0xff]  ;;  %305 = vmatprep.subr.msk.mxu0 %vm54_vm0, %v28_v0  ;;  %319 = vmatprep.subr.msk.mxu1 %vm54_vm0, %v28_v0  ;;  %v25_v5 = vld [vmem:[%s460_s0 + $0x28] sm:$0xff]  ;;  %v26_v6 = vld [vmem:[%s460_s0 + $0x30] sm:$0xff] }
   0x3   :  { %307 = vmatprep.mubr.msk.f32.mxu0 %vm29_vm1, %v20_v1  ;;  %v24_v4 = vld [vmem:[%s460_s0 + $0x20] sm:$0xff]  ;;  %306 = vmatpush3.msk.msra.mxu0 %vm54_vm0, %v28_v0  ;;  %v23_v7 = vld [vmem:[%s460_s0 + $0x18] sm:$0xff] }
   0x4   :  { %308 = vmatmul.mubr.msk.f32.vlgmr.msra.gmra.mrb[0].mxu0 %vm29_vm1, %v21_v2  ;;  %320 = vmatpush3.msk.msra.mxu1 %vm54_vm0, %v28_v0  ;;  %v27_v8 = vld [vmem:[%s460_s0 + $0x38] sm:$0xff] }
   0x5   :  { %310 = vmatprep.mubr.msk.f32.mxu0 %vm29_vm1, %v22_v3  ;;  %313 = vmatprep.mubr.msk.f32.mxu1 %vm29_vm1, %v24_v4 }
   0x6   :  { %314 = vmatmul.mubr.msk.f32.vlgmr.msra.gmra.mrb[0].mxu1 %vm29_vm1, %v25_v5 }
   0x7   :  { %316 = vmatprep.mubr.msk.f32.mxu1 %vm29_vm1, %v26_v6 }
   0x8   :  { %311 = vmatmul.mubr.msk.f32.gmra.mrb[2].mxu0 %vm29_vm1, %v23_v7 }
   0xa   :  { %317 = vmatmul.mubr.msk.f32.gmra.mrb[2].mxu1 %vm29_vm1, %v27_v8 }
  0xd7   :  { %v309_v9 = vpop.f32.mrb[0].mxu0 }
  0xd8   :  { %v167_v10 = vsel %vm165_vm2, %v309_v9, 0.0  ;;  %v124_v11 = vpop.f32.mrb[1].mxu0 }
  0xd9   :  { %v166_v12 = vsel %vm165_vm2, %v124_v11, 0.0  ;;  %v315_v13 = vpop.f32.mrb[0].mxu1 }
  0xda   :  { %v168_v14 = vadd.f32 %v167_v10, %v166_v12  ;;  %v144_v15 = vpop.f32.mrb[1].mxu1  ;;  %v175_v26 = vsel %vm165_vm2, %v315_v13, 0.0 }
  0xdb   :  { %v312_v16 = vpop.f32.mrb[2].mxu0  ;;  %v173_v23 = vsel %vm165_vm2, %v144_v15, 0.0 }
  0xdc   :  { %v134_v17 = vpop.f32.mrb[3].mxu0  ;;  %v171_v22 = vsel %vm165_vm2, %v312_v16, 0.0 }
  0xdd   :  { %v169_v18 = vsel %vm165_vm2, %v134_v17, 0.0  ;;  %v318_v19 = vpop.f32.mrb[2].mxu1 }
  0xde   :  { %v170_v20 = vadd.f32 %v169_v18, %v168_v14  ;;  %v154_v21 = vpop.f32.mrb[3].mxu1  ;;  %v179_v30 = vsel %vm165_vm2, %v318_v19, 0.0 }
  0xdf   :  { %v177_v27 = vsel %vm165_vm2, %v154_v21, 0.0 }
  0xe0   :  { %v172_v24 = vadd.f32 %v171_v22, %v170_v20  ;;  %v295_v20 = vld [vmem:[%s462_s4] ss:$0 sm:$0xff] }
  0xe2   :  { %v174_v25 = vadd.f32 %v173_v23, %v172_v24 }
  0xe4   :  { %v176_v28 = vadd.f32 %v175_v26, %v174_v25 }
  0xe6   :  { %v178_v29 = vadd.f32 %v177_v27, %v176_v28 }
  0xe8   :  { %v180_v31 = vadd.f32 %v179_v30, %v178_v29 }
  0xea   :  { %v181_v32 = vrot.slane %v180_v31, 4 }
  0xec   :  { %v182_v33 = vadd.f32 %v181_v32, %v180_v31 }
  0xee   :  { %v183_v34 = vrot.slane %v182_v33, 2 }
  0xf0   :  { %v184_v35 = vadd.f32 %v183_v34, %v182_v33 }
  0xf2   :  { %v185_v36 = vrot.slane %v184_v35, 1 }
  0xf4   :  { %v186_v37 = vadd.f32 %v185_v36, %v184_v35 }
  0xf6   :  { %v188_v38 = vmul.f32 0.015625, %v186_v37 }
  0xf8   :  { %v189_v39 = vsub.f32 %v124_v11, %v188_v38  ;;  %v190_v40 = vsub.f32 %v309_v9, %v188_v38  ;;  %v191_v41 = vsub.f32 %v134_v17, %v188_v38  ;;  %v192_v42 = vsub.f32 %v312_v16, %v188_v38 }
  0xf9   :  { %v193_v43 = vsub.f32 %v144_v15, %v188_v38  ;;  %v194_v44 = vsub.f32 %v315_v13, %v188_v38  ;;  %v195_v45 = vsub.f32 %v154_v21, %v188_v38  ;;  %v196_v46 = vsub.f32 %v318_v19, %v188_v38  ;;  %v294_v15 = vld [vmem:[%s461_s3] ss:$0 sm:$0xff] }
  0xfa   :  { %v197_v47 = vmul.f32 %v189_v39, %v189_v39  ;;  %v198_v48 = vmul.f32 %v190_v40, %v190_v40  ;;  %v199_v49 = vmul.f32 %v191_v41, %v191_v41  ;;  %v200_v50 = vmul.f32 %v192_v42, %v192_v42 }
  0xfb   :  { %v201_v54 = vmul.f32 %v193_v43, %v193_v43  ;;  %v202_v57 = vmul.f32 %v194_v44, %v194_v44  ;;  %v203_v60 = vmul.f32 %v195_v45, %v195_v45  ;;  %v204_v63 = vmul.f32 %v196_v46, %v196_v46 }
  0xfc   :  { %v205_v51 = vsel %vm165_vm2, %v197_v47, 0.0  ;;  %v206_v52 = vsel %vm165_vm2, %v198_v48, 0.0  ;;  %v208_v55 = vsel %vm165_vm2, %v199_v49, 0.0  ;;  %v210_v58 = vsel %vm165_vm2, %v200_v50, 0.0 }
  0xfd   :  { %v207_v53 = vadd.f32 %v206_v52, %v205_v51  ;;  %v212_v61 = vsel %vm165_vm2, %v201_v54, 0.0  ;;  %v214_v0 = vsel %vm165_vm2, %v202_v57, 0.0  ;;  %v216_v2 = vsel %vm165_vm2, %v203_v60, 0.0 }
  0xfe   :  { %v218_v4 = vsel %vm165_vm2, %v204_v63, 0.0 }
  0xff   :  { %v209_v56 = vadd.f32 %v208_v55, %v207_v53 }
 0x101   :  { %v211_v59 = vadd.f32 %v210_v58, %v209_v56 }
 0x103   :  { %v213_v62 = vadd.f32 %v212_v61, %v211_v59 }
 0x105   :  { %v215_v1 = vadd.f32 %v214_v0, %v213_v62 }
 0x107   :  { %v217_v3 = vadd.f32 %v216_v2, %v215_v1 }
 0x109   :  { %v219_v5 = vadd.f32 %v218_v4, %v217_v3 }
 0x10b   :  { %v220_v6 = vrot.slane %v219_v5, 4 }
 0x10d   :  { %v221_v7 = vadd.f32 %v220_v6, %v219_v5 }
 0x10f   :  { %v222_v8 = vrot.slane %v221_v7, 2 }
 0x111   :  { %v223_v9 = vadd.f32 %v222_v8, %v221_v7 }
 0x113   :  { %v224_v10 = vrot.slane %v223_v9, 1 }
 0x115   :  { %v225_v11 = vadd.f32 %v224_v10, %v223_v9 }
 0x117   :  { %v226_v12 = vmul.f32 0.015625, %v225_v11 }
 0x119   :  { %v227_v13 = vadd.f32 1e-05, %v226_v12 }
 0x11b   :  { %321 = vrsqrt.f32 %v227_v13 }
 0x125   :  { %v322_v14 = vpop.eup %321 }
 0x126   :  { %v229_v16 = vmul.f32 %v322_v14, %v189_v39  ;;  %v230_v17 = vmul.f32 %v322_v14, %v190_v40  ;;  %v231_v18 = vmul.f32 %v322_v14, %v191_v41  ;;  %v232_v19 = vmul.f32 %v322_v14, %v192_v42 }
 0x127   :  { %v233_v21 = vmul.f32 %v322_v14, %v193_v43  ;;  %v234_v22 = vmul.f32 %v322_v14, %v194_v44  ;;  %v235_v23 = vmul.f32 %v322_v14, %v195_v45  ;;  %v236_v24 = vmul.f32 %v322_v14, %v196_v46 }
 0x128   :  { %v243_v25 = vmul.f32 %v294_v15, %v229_v16  ;;  %v244_v26 = vmul.f32 %v294_v15, %v230_v17  ;;  %v245_v27 = vmul.f32 %v294_v15, %v231_v18  ;;  %v246_v28 = vmul.f32 %v294_v15, %v232_v19 }
 0x129   :  { %v247_v29 = vmul.f32 %v294_v15, %v233_v21  ;;  %v248_v30 = vmul.f32 %v294_v15, %v234_v22  ;;  %v249_v31 = vmul.f32 %v294_v15, %v235_v23  ;;  %v250_v35 = vmul.f32 %v294_v15, %v236_v24 }
 0x12a   :  { %v257_v32 = vadd.f32 %v295_v20, %v243_v25  ;;  %v258_v33 = vadd.f32 %v295_v20, %v244_v26  ;;  %v259_v34 = vadd.f32 %v295_v20, %v245_v27  ;;  %v260_v36 = vadd.f32 %v295_v20, %v246_v28 }
 0x12b   :  { %v261_v37 = vadd.f32 %v295_v20, %v247_v29  ;;  %v262_v38 = vadd.f32 %v295_v20, %v248_v30  ;;  %v263_v39 = vadd.f32 %v295_v20, %v249_v31  ;;  %v264_v40 = vadd.f32 %v295_v20, %v250_v35 }
 0x12c   :  { %323 = vtanh.f32 %v257_v32 }
 0x12d   :  { %325 = vtanh.f32 %v258_v33 }
 0x12e   :  { %327 = vtanh.f32 %v259_v34 }
 0x12f   :  { %329 = vtanh.f32 %v260_v36 }
 0x130   :  { %331 = vtanh.f32 %v261_v37 }
 0x131   :  { %333 = vtanh.f32 %v262_v38 }
 0x132   :  { %335 = vtanh.f32 %v263_v39 }
 0x133   :  { %337 = vtanh.f32 %v264_v40 }
 0x136   :  { %v324_v41 = vpop.eup %323 }
 0x137   :  { %v326_v42 = vpop.eup %325  ;;  %273 = vst.msk [vmem:[%s463_s5] sm:$0xff] %vm165_vm2, %v324_v41 }
 0x138   :  { %v328_v43 = vpop.eup %327  ;;  %274 = vst.msk [vmem:[%s463_s5 + $0x8] sm:$0xff] %vm165_vm2, %v326_v42 }
 0x139   :  { %v330_v44 = vpop.eup %329  ;;  %275 = vst.msk [vmem:[%s463_s5 + $0x10] sm:$0xff] %vm165_vm2, %v328_v43 }
 0x13a   :  { %v332_v45 = vpop.eup %331  ;;  %276 = vst.msk [vmem:[%s463_s5 + $0x18] sm:$0xff] %vm165_vm2, %v330_v44 }
 0x13b   :  { %v334_v46 = vpop.eup %333  ;;  %277 = vst.msk [vmem:[%s463_s5 + $0x20] sm:$0xff] %vm165_vm2, %v332_v45 }
 0x13c   :  { %v336_v47 = vpop.eup %335  ;;  %278 = vst.msk [vmem:[%s463_s5 + $0x28] sm:$0xff] %vm165_vm2, %v334_v46 }
 0x13d   :  { %v338_v48 = vpop.eup %337  ;;  %279 = vst.msk [vmem:[%s463_s5 + $0x30] sm:$0xff] %vm165_vm2, %v336_v47 }
 0x13e   :  { %280 = vst.msk [vmem:[%s463_s5 + $0x38] sm:$0xff] %vm165_vm2, %v338_v48 }

</bundles_post_ra>
